<compile_context>
chip_gen: v7x
topology: tpu7x:2x2x1
jax: 0.10.0
libtpu: 0.0.40
codegen_flags: <defaults>
</compile_context>

<pallas_src>
import jax
import jax.numpy as jnp
from jax.experimental import pallas as pl
from jax.experimental.pallas import tpu as pltpu


def _round_up(a: int, m: int) -> int:
    return ((a + m - 1) // m) * m


def _make_triplet_kernel(margin: float):
    margin = float(margin)  # plain Python literal -> folded, not captured

    def kernel(n_ref, x_ref, out_ref):
        # x_ref block: (3, tile_n, d) = [anchor, positive, negative] slabs.
        a = x_ref[0].astype(jnp.float32)
        p = x_ref[1].astype(jnp.float32)
        g = x_ref[2].astype(jnp.float32)

        dap = a - p
        dan = a - g
        dp = jnp.sum(dap * dap, axis=1, keepdims=True)   # (tile_n, 1)
        dn = jnp.sum(dan * dan, axis=1, keepdims=True)   # (tile_n, 1)
        losses = jnp.maximum(dp - dn + margin, 0.0)

        # Mask rows of the (possibly ragged) last N tile.
        tile_n = losses.shape[0]
        row = pl.program_id(0) * tile_n + jax.lax.broadcasted_iota(
            jnp.int32, (tile_n, 1), 0)
        losses = jnp.where(row < n_ref[0], losses, 0.0)

        # Lane-dense writeback of the per-tile partial sum.
        tile_sum = jnp.sum(losses)
        out_ref[...] = jnp.broadcast_to(tile_sum, out_ref.shape).astype(out_ref.dtype)

    return kernel


def _triplet_reference(x, margin: float = 0.1, size_average: bool = True):
    """Pure-JAX reference mirroring the PyTorch forward exactly."""
    b = x.shape[0]
    n = b // 3
    flat = x.reshape(b, -1).astype(jnp.float32)
    a, p, g = flat[:n], flat[n:2 * n], flat[2 * n:3 * n]
    dp = jnp.sum((a - p) ** 2, axis=1)
    dn = jnp.sum((a - g) ** 2, axis=1)
    losses = jnp.maximum(dp - dn + margin, 0.0)
    return jnp.mean(losses) if size_average else jnp.sum(losses)


def offline_triplet_loss(x, margin: float = 0.1, size_average: bool = True):
    """JAX/Pallas equivalent of OfflineTripletLoss.forward([x], size_average)."""
    b = int(x.shape[0])
    if b < 3 or b % 3 != 0:
        raise ValueError("OfflineTripletLoss needs a batch size divisible by 3")
    n = b // 3
    d = 1
    for s in x.shape[1:]:
        d *= int(s)

    # anchor / positive / negative stacked along a leading axis of size 3
    # (pure reshape -- no pad, no dtype change, no extra HBM copy).
    x3 = x.reshape(3, n, d)
    itemsize = jnp.dtype(x.dtype).itemsize

    # ---- generation-aware VMEM budget -------------------------------------
    try:
        vmem_cap = int(pltpu.get_tpu_info().vmem_capacity_bytes)
    except Exception:
        vmem_cap = 64 * 1024 * 1024            # assume the smallest (v7x per-TC)
    if vmem_cap >= 128 * 1024 * 1024:          # v5e / v6e: 128 MiB physical
        vmem_limit = 64 * 1024 * 1024
    else:                                       # v7x: 64 MiB physical
        vmem_limit = 32 * 1024 * 1024
    # Two pipeline buffers for the single input + ~4 MiB compiler headroom;
    # anything past a few MiB per buffer is already at the HBM roofline knee.
    per_buffer_budget = min((vmem_limit - (4 << 20)) // 2, 16 << 20)

    row_bytes = 3 * d * itemsize               # bytes per batch row in a block
    if 8 * row_bytes > per_buffer_budget:
        # TODO(synk): add a D-tiled accumulator kernel for pathological feature
        # sizes (d > ~1M f32 features); fall back to a fused XLA reduction.
        return _triplet_reference(x, margin=margin, size_average=size_average)

    # ---- N tiling (full D per block) --------------------------------------
    max_tile_n = max(8, (per_buffer_budget // row_bytes) // 8 * 8)
    full_bytes = n * row_bytes
    if n <= max_tile_n:
        if n >= 16 and full_bytes >= (1 << 20):
            # Split into >=2 "parallel" tiles so v7x megacore uses both TCs.
            tile_n = _round_up(-(-n // 2), 8)
        else:
            tile_n = n                         # single full-dim block
    else:
        tile_n = max_tile_n
    num_nt = -(-n // tile_n)                   # cdiv; last tile may be ragged

    partial = pl.pallas_call(
        _make_triplet_kernel(margin),
        out_shape=jax.ShapeDtypeStruct((num_nt, 8, 128), jnp.float32),
        grid_spec=pltpu.PrefetchScalarGridSpec(
            num_scalar_prefetch=1,             # n_valid in SMEM
            grid=(num_nt,),
            in_specs=[
                pl.BlockSpec((3, tile_n, d), lambda i, n_ref: (0, i, 0)),
            ],
            out_specs=pl.BlockSpec((1, 8, 128), lambda i, n_ref: (i, 0, 0)),
        ),
        compiler_params=pltpu.CompilerParams(
            dimension_semantics=("parallel",),
            vmem_limit_bytes=vmem_limit,
        ),
    )(jnp.asarray([n], dtype=jnp.int32), x3)

    total = jnp.sum(partial[:, 0, 0])
    if size_average:
        return total / jnp.float32(n)
    return total


if __name__ == "__main__":
    k1, k2, k3 = jax.random.split(jax.random.PRNGKey(0), 3)

    # Case 1: small, lane-aligned feature dim (n=2, d=1024) -> single tile.
    x1 = jax.random.normal(k1, (6, 4, 16, 16), dtype=jnp.float32)
    # Case 2: awkward shapes (n=3, d=105) -> full-dim block, no padding copy.
    x2 = jax.random.normal(k2, (9, 3, 7, 5), dtype=jnp.float32)
    # Case 3: n=100, d=2048 -> two "parallel" N tiles, ragged masked last tile.
    x3 = jax.random.normal(k3, (300, 8, 16, 16), dtype=jnp.float32)

    for x in (x1, x2, x3):
        for size_average in (True, False):
            out = jax.block_until_ready(
                offline_triplet_loss(x, margin=0.1, size_average=size_average))
            ref = _triplet_reference(x, margin=0.1, size_average=size_average)
            assert jnp.allclose(out, ref, rtol=1e-3, atol=1e-2), (
                x.shape, size_average, out, ref)

    print("KERNEL_OK")
</pallas_src>

<mosaic_0001>
module attributes {stable_mosaic.version = 11 : i64} {
  func.func @kernel(%arg0: i32, %arg1: memref<1xi32, #tpu.memory_space<smem>>, %arg2: memref<3x2x1024xf32, #tpu.memory_space<vmem>>, %arg3: memref<1x8x128xf32, #tpu.memory_space<vmem>>) attributes {dimension_semantics = [#tpu.dimension_semantics<parallel>], iteration_bounds = array<i64: 1>, scalar_prefetch = 1 : i64, scratch_operands = 0 : i64, tpu.core_type = #tpu.core_type<tc>, window_params = [{transform_indices = @transform_0, window_bounds = array<i64: 3, 2, 1024>}, {transform_indices = @transform_1, window_bounds = array<i64: 1, 8, 128>}]} {
    %c0 = arith.constant 0 : index
    %c0_0 = arith.constant 0 : index
    %c0_1 = arith.constant 0 : index
    %0 = vector.load %arg2[%c0, %c0_0, %c0_1] : memref<3x2x1024xf32, #tpu.memory_space<vmem>>, vector<1x2x1024xf32>
    %1 = vector.shape_cast %0 : vector<1x2x1024xf32> to vector<2x1024xf32>
    %c1 = arith.constant 1 : index
    %c0_2 = arith.constant 0 : index
    %c0_3 = arith.constant 0 : index
    %2 = vector.load %arg2[%c1, %c0_2, %c0_3] : memref<3x2x1024xf32, #tpu.memory_space<vmem>>, vector<1x2x1024xf32>
    %3 = vector.shape_cast %2 : vector<1x2x1024xf32> to vector<2x1024xf32>
    %c2 = arith.constant 2 : index
    %c0_4 = arith.constant 0 : index
    %c0_5 = arith.constant 0 : index
    %4 = vector.load %arg2[%c2, %c0_4, %c0_5] : memref<3x2x1024xf32, #tpu.memory_space<vmem>>, vector<1x2x1024xf32>
    %5 = vector.shape_cast %4 : vector<1x2x1024xf32> to vector<2x1024xf32>
    %6 = arith.subf %1, %3 : vector<2x1024xf32>
    %7 = arith.subf %1, %5 : vector<2x1024xf32>
    %8 = arith.mulf %6, %6 : vector<2x1024xf32>
    %cst = arith.constant dense<0.000000e+00> : vector<2xf32>
    %9 = vector.multi_reduction <add>, %8, %cst [1] : vector<2x1024xf32> to vector<2xf32>
    %10 = vector.shape_cast %9 : vector<2xf32> to vector<2x1xf32>
    %11 = arith.mulf %7, %7 : vector<2x1024xf32>
    %cst_6 = arith.constant dense<0.000000e+00> : vector<2xf32>
    %12 = vector.multi_reduction <add>, %11, %cst_6 [1] : vector<2x1024xf32> to vector<2xf32>
    %13 = vector.shape_cast %12 : vector<2xf32> to vector<2x1xf32>
    %14 = arith.subf %10, %13 : vector<2x1xf32>
    %cst_7 = arith.constant 1.000000e-01 : f32
    %15 = vector.broadcast %cst_7 : f32 to vector<2x1xf32>
    %16 = arith.addf %14, %15 : vector<2x1xf32>
    %cst_8 = arith.constant 0.000000e+00 : f32
    %17 = vector.broadcast %cst_8 : f32 to vector<2x1xf32>
    %18 = arith.maximumf %16, %17 : vector<2x1xf32>
    %c2_i32 = arith.constant 2 : i32
    %19 = arith.muli %arg0, %c2_i32 : i32
    %20 = tpu.iota {dimensions = array<i32: 0>} : vector<2x1xi32>
    %21 = vector.broadcast %19 : i32 to vector<2x1xi32>
    %22 = arith.addi %21, %20 : vector<2x1xi32>
    %c0_9 = arith.constant 0 : index
    %23 = memref.load %arg1[%c0_9] : memref<1xi32, #tpu.memory_space<smem>>
    %24 = vector.broadcast %23 : i32 to vector<2x1xi32>
    %25 = arith.cmpi slt, %22, %24 : vector<2x1xi32>
    %cst_10 = arith.constant 0.000000e+00 : f32
    %26 = vector.broadcast %cst_10 : f32 to vector<2x1xf32>
    %27 = arith.select %25, %18, %26 : vector<2x1xi1>, vector<2x1xf32>
    %28 = vector.shape_cast %27 : vector<2x1xf32> to vector<1x2x1xf32>
    %cst_11 = arith.constant dense<0.000000e+00> : vector<1xf32>
    %29 = vector.multi_reduction <add>, %28, %cst_11 [1, 2] : vector<1x2x1xf32> to vector<1xf32>
    %30 = vector.shape_cast %29 : vector<1xf32> to vector<1x1x1xf32>
    %31 = vector.extract %30[0, 0, 0] : f32 from vector<1x1x1xf32>
    %32 = vector.broadcast %31 : f32 to vector<1x8x128xf32>
    %c0_12 = arith.constant 0 : index
    %c0_13 = arith.constant 0 : index
    %c0_14 = arith.constant 0 : index
    %33 = vector.load %arg3[%c0_12, %c0_13, %c0_14] : memref<1x8x128xf32, #tpu.memory_space<vmem>>, vector<1x8x128xf32>
    tpu.vector_store %arg3[%c0_12, %c0_13, %c0_14], %32 {strides = array<i32>} : memref<1x8x128xf32, #tpu.memory_space<vmem>>, vector<1x8x128xf32>,
    return
  }
  func.func @transform_0(%arg0: i32, %arg1: memref<1xi32, #tpu.memory_space<smem>>) -> (i32, i32, i32) {
    %c0_i32 = arith.constant 0 : i32
    %c0_i32_0 = arith.constant 0 : i32
    %c0_i32_1 = arith.constant 0 : i32
    return %c0_i32, %arg0, %c0_i32_0 : i32, i32, i32
  }
  func.func @transform_1(%arg0: i32, %arg1: memref<1xi32, #tpu.memory_space<smem>>) -> (i32, i32, i32) {
    %c0_i32 = arith.constant 0 : i32
    %c0_i32_0 = arith.constant 0 : i32
    %c0_i32_1 = arith.constant 0 : i32
    return %arg0, %c0_i32, %c0_i32_0 : i32, i32, i32
  }
}

</mosaic_0001>

<bundles_post_ra>
// kernel: tpu_custom_call.1
= control target key start
LH: loop header
LB: loop body
LE: loop exit
PB: predicated region body
PF: predicated region fallthrough
CT: control target
= control target key end

     0   :  { %8 = vsyncpa [#allocation5], 0  ;;  %s326_s0 = inlined_call_operand.<no memory space> [shape: s32[1], index: 0, kind: input, shape index: {}]   ;;  %s327_s1 = inlined_call_operand.hbm [shape: f32[3,2,1024], index: 1, kind: input, shape index: {}]   ;;  %s328_s2 = inlined_call_operand.hbm [shape: f32[1,8,128], index: 2, kind: output, shape index: {}]  }
   0x1   :  { %9 = vsyncpa [#allocation6], 0  ;;  %s259_s9 = smov [#allocation4]   ;;  %s211_s13 = scalar_lea.hbm %s327_s1, 768 }
   0x2   :  { %s15_s10 = sshll.u32 %s259_s9, 4  ;;  %p212_p0 = scmp.ne.s32.totalorder %s327_s1, %s211_s13  ;;  %s16_s10 = int_to_ptr.vmem [resolvable:$true] %s15_s10 }
   0x3   :  { %p215_p1 = scmp.lt.u32.totalorder %s211_s13, %s327_s1 }
   0x5   :  { %p217_p2 = pnand %p215_p1, %p212_p0 }
   0x7   :  { %220 = shalt.err (!%p217_p2)
}
   0x8   :  { %s221_s18 = scalar_lea.vmem %s16_s10, 768  ;;  %p226_p4 = scmp.lt.s32.totalorder %s16_s10, %s16_s10 }
   0x9   :  { %p222_p3 = scmp.ne.s32.totalorder %s16_s10, %s221_s18  ;;  %p227_p5 = scmp.lt.s32.totalorder %s221_s18, %s221_s18 }
   0xb   :  { %p228_p6 = por %p227_p5, %p226_p4 }
   0xd   :  { %p229_p7 = pnand %p228_p6, %p222_p3 }
   0xf   :  { %232 = shalt.err (!%p229_p7)
}
  0x10   :  { %s260_s19 = smov 256   ;;  %s261_s20 = smov 16  }
  0x11   :  { %21 = dma.hbm_to_vmem [thread:$0]  %s327_s1, 768, %s16_s10, [#allocation5], %s260_s19, %s260_s19, %s261_s20  }
  0x12   :  { %255 = dma.done.wait [#allocation5], 768  }
  0x13   :  { %256 = vsyncadd [#allocation5], 4294966528  ;;  %v45_v0 = vlaneseq  ;;  %v262_v1 = vmov 1983009808   ;;  %v25_v5 = vld [vmem:[#allocation4] sm:$0xff]  ;;  %v26_v6 = vld [vmem:[#allocation4 + $0x8] sm:$0xff] }
  0x14   :  { %v43_v2 = vunpack.c.l.s4 %v262_v1  ;;  %v28_v7 = vld [vmem:[#allocation4 + $0x10] sm:$0xff]  ;;  %v29_v8 = vld [vmem:[#allocation4 + $0x18] sm:$0xff]  ;;  %v31_v11 = vld [vmem:[#allocation4 + $0x20] sm:$0xff]  ;;  %vm83_vm0 = vcmask 1041408   ;;  %vm176_vm2 = vcmask 1024   ;;  %s263_s24 = smov [#allocation7]  }
  0x15   :  { %v291_v4 = vshrl.u32 %v45_v0, 7  ;;  %v33_v9 = vsub.f32 %v25_v5, %v28_v7  ;;  %v32_v12 = vld [vmem:[#allocation4 + $0x28] sm:$0xff]  ;;  %v34_v13 = vsub.f32 %v26_v6, %v29_v8  ;;  %v35_v14 = vsub.f32 %v25_v5, %v31_v11  ;;  %s195_s25 = sshll.u32 %s263_s24, 4  ;;  %s196_s25 = int_to_ptr.vmem [resolvable:$true] %s195_s25 }
  0x16   :  { %v44_v3 = vunpack.c.0.s8 %v43_v2  ;;  %v36_v15 = vsub.f32 %v26_v6, %v32_v12  ;;  %p238_p9 = scmp.lt.s32.totalorder %s196_s25, %s196_s25 }
  0x17   :  { %v37_v16 = vmul.f32 %v33_v9, %v33_v9  ;;  %v38_v17 = vmul.f32 %v34_v13, %v34_v13  ;;  %v101_v18 = vmul.f32 %v35_v14, %v35_v14 }
  0x18   :  { %v47_v10 = vsub.s32 %v44_v3, %v291_v4  ;;  %v102_v22 = vmul.f32 %v36_v15, %v36_v15 }
  0x19   :  { %v41_v19 = vcombine.high %v37_v16, %v37_v16  ;;  %v58_v21 = vcombine.high %v38_v17, %v38_v17  ;;  %v105_v23 = vcombine.high %v101_v18, %v101_v18 }
  0x1a   :  { %v48_v20 = vrot.slane %v37_v16, %v47_v10  ;;  %v112_v24 = vrot.slane %v101_v18, %v47_v10  ;;  %v65_v27 = vrot.slane %v38_v17, %v47_v10  ;;  %v122_v36 = vcombine.high %v102_v22, %v102_v22 }
  0x1b   :  { %v55_v25 = vrot.slane %v41_v19, %v47_v10  ;;  %v119_v29 = vrot.slane %v105_v23, %v47_v10  ;;  %v72_v34 = vrot.slane %v58_v21, %v47_v10  ;;  %v129_v40 = vrot.slane %v102_v22, %v47_v10 }
  0x1c   :  { %v56_v26 = vcombine.high %v48_v20, %v48_v20  ;;  %v84_v28 = vsel %vm83_vm0, %v48_v20, 0.0  ;;  %v120_v33 = vcombine.high %v112_v24, %v112_v24  ;;  %v73_v37 = vcombine.high %v65_v27, %v65_v27 }
  0x1d   :  { %v57_v30 = vcombine.high %v55_v25, %v55_v25  ;;  %v87_v32 = vsel %vm83_vm0, %v55_v25, 0.0  ;;  %v121_v39 = vcombine.high %v119_v29, %v119_v29  ;;  %v147_v42 = vsel %vm83_vm0, %v112_v24, 0.0 }
  0x1e   :  { %v85_v31 = vsel %vm83_vm0, %v56_v26, 0.0  ;;  %v148_v43 = vsel %vm83_vm0, %v120_v33, 0.0  ;;  %v91_v44 = vsel %vm83_vm0, %v65_v27, 0.0  ;;  %v150_v46 = vsel %vm83_vm0, %v119_v29, 0.0 }
  0x1f   :  { %v86_v35 = vadd.f32 %v85_v31, %v84_v28  ;;  %v89_v38 = vsel %vm83_vm0, %v57_v30, 0.0  ;;  %v149_v45 = vadd.f32 %v148_v43, %v147_v42  ;;  %v136_v48 = vrot.slane %v122_v36, %v47_v10 }
  0x20   :  { %v137_v49 = vcombine.high %v129_v40, %v129_v40  ;;  %v152_v50 = vsel %vm83_vm0, %v121_v39, 0.0  ;;  %v74_v51 = vcombine.high %v72_v34, %v72_v34  ;;  %v93_v52 = vsel %vm83_vm0, %v73_v37, 0.0 }
  0x21   :  { %v88_v41 = vadd.f32 %v87_v32, %v86_v35  ;;  %v151_v53 = vadd.f32 %v150_v46, %v149_v45  ;;  %v154_v55 = vsel %vm83_vm0, %v129_v40, 0.0  ;;  %v95_v56 = vsel %vm83_vm0, %v72_v34, 0.0 }
  0x22   :  { %v138_v59 = vcombine.high %v136_v48, %v136_v48  ;;  %v156_v60 = vsel %vm83_vm0, %v137_v49, 0.0  ;;  %v97_v61 = vsel %vm83_vm0, %v74_v51, 0.0  ;;  %v158_v0 = vsel %vm83_vm0, %v136_v48, 0.0 }
  0x23   :  { %v90_v47 = vadd.f32 %v89_v38, %v88_v41  ;;  %v153_v57 = vadd.f32 %v152_v50, %v151_v53  ;;  %v173_v10 = vstv %s326_s0  ;;  %s233_s0 = scalar_lea.vmem %s196_s25, 128 }
  0x24   :  { %v160_v3 = vsel %vm83_vm0, %v138_v59, 0.0  ;;  %vm174_vm1 = vcmp.lt.s32.totalorder %v291_v4, %v173_v10  ;;  %p234_p8 = scmp.ne.s32.totalorder %s196_s25, %s233_s0  ;;  %p239_p10 = scmp.lt.s32.totalorder %s233_s0, %s233_s0 }
  0x25   :  { %v92_v54 = vadd.f32 %v91_v44, %v90_v47  ;;  %v155_v62 = vadd.f32 %v154_v55, %v153_v57 }
  0x26   :  { %p240_p11 = por %p239_p10, %p238_p9 }
  0x27   :  { %v94_v58 = vadd.f32 %v93_v52, %v92_v54  ;;  %v157_v1 = vadd.f32 %v156_v60, %v155_v62 }
  0x28   :  { %p241_p12 = pnand %p240_p11, %p234_p8 }
  0x29   :  { %v96_v63 = vadd.f32 %v95_v56, %v94_v58  ;;  %v159_v5 = vadd.f32 %v158_v0, %v157_v1 }
  0x2b   :  { %v98_v2 = vadd.f32 %v97_v61, %v96_v63  ;;  %v161_v6 = vadd.f32 %v160_v3, %v159_v5 }
  0x2d   :  { %99 = vadd.xlane.f32.xlu0 %v98_v2 }
  0x31   :  { %162 = vadd.xlane.f32.xlu0 %v161_v6 }
  0xba   :  { %v100_v7 = vpop.xlane.xlu0 %99 }
  0xbe   :  { %v163_v8 = vpop.xlane.xlu0 %162 }
  0xbf   :  { %v164_v9 = vsub.f32 %v100_v7, %v163_v8 }
  0xc1   :  { %v165_v11 = vadd.f32 0.1, %v164_v9 }
  0xc3   :  { %v166_v12 = vmax.f32 %v165_v11, 0.0 }
  0xc5   :  { %v175_v13 = vsel %vm174_vm1, %v166_v12, 0.0 }
  0xc6   :  { %v177_v14 = vsel %vm176_vm2, %v175_v13, 0.0 }
  0xc7   :  { %178 = vadd.xlane.f32.xlu1 %v177_v14 }
 0x154   :  { %v179_v15 = vpop.xlane.xlu1 %178 }
 0x155   :  { %v180_v16 = vrot.slane %v179_v15, 4 }
 0x157   :  { %v181_v17 = vadd.f32 %v180_v16, %v179_v15 }
 0x159   :  { %v182_v18 = vrot.slane %v181_v17, 2 }
 0x15b   :  { %v183_v19 = vadd.f32 %v182_v18, %v181_v17 }
 0x15d   :  { %v184_v20 = vrot.slane %v183_v19, 1 }
 0x15f   :  { %v185_v21 = vadd.f32 %v184_v20, %v183_v19 }
 0x161   :  { %204 = vpush %v185_v21 }
 0x192   :  { %s205_s26 = spop %204 }
 0x193   :  { %v187_v22 = vstv %s205_s26 }
 0x194   :  { %188 = vst [vmem:[#allocation7] sm:$0xff] %v187_v22 }
 0x195   :  { %244 = shalt.err (!%p241_p12)
}
 0x196   :  { %s245_s29 = scalar_lea.hbm %s328_s2, 128 }
 0x197   :  { %p246_p13 = scmp.ne.s32.totalorder %s328_s2, %s245_s29  ;;  %p249_p0 = scmp.lt.u32.totalorder %s245_s29, %s328_s2 }
 0x199   :  { %p251_p1 = pnand %p249_p0, %p246_p13 }
 0x19b   :  { %254 = shalt.err (!%p251_p1)
}
 0x19c   :  { %198 = dma.vmem_to_hbm [thread:$0]  %s196_s25, 128, %s328_s2, [#allocation6]  }
 0x19d   :  { %257 = dma.done.wait [#allocation6], 128  }
 0x19e   :  { %258 = vsyncadd [#allocation6], 4294967168 }
 0x19f   :  { %202 = vsyncpa [#allocation5], 1 }
 0x1a0   :  { %203 = vsyncpa [#allocation6], 1 }

</bundles_post_ra>
